<compile_context>
chip_gen: v7x
topology: tpu7x:2x2x1
jax: 0.10.0
libtpu: 0.0.40
codegen_flags: <defaults>
</compile_context>

<pallas_src>
from functools import partial
from math import sqrt

import jax
import jax.numpy as jnp
from jax.experimental import pallas as pl
from jax.experimental.pallas import tpu as pltpu


def _conv1d_halo_kernel(x_ref, h_ref, w_ref, b_ref, o_ref, xw_ref, *,
                        K, stride, dilation, l_tile):
    """One (batch, L-tile) step: K accumulated MXU matmuls over a haloed tile.

    x_ref : (1, S, C_in, L_tile)       main phase-decomposed input tile
    h_ref : (1, S, C_in, halo)         halo = first columns of the next tile
    w_ref : (K, C_out, C_in)           per-tap weights
    b_ref : (C_out, 1)                 f32 bias
    o_ref : (1, C_out, L_tile)         output tile
    xw_ref: (S, C_in, L_tile + halo)   VMEM scratch: main tile ++ halo
    """
    # Assemble the haloed window in VMEM (cheap: VMEM bandwidth >> HBM).
    xw_ref[:, :, :l_tile] = x_ref[0]
    xw_ref[:, :, l_tile:] = h_ref[0]

    acc = jnp.zeros(o_ref.shape[1:], jnp.float32)          # (C_out, L_tile)
    for k in range(K):                                      # small, static -> unrolled
        p = (k * dilation) % stride                         # phase of tap k
        q = (k * dilation) // stride                        # lane offset of tap k
        tap = xw_ref[p, :, q:q + l_tile]                    # (C_in, L_tile), unit stride
        acc = acc + jnp.dot(w_ref[k], tap,
                            preferred_element_type=jnp.float32)
    o_ref[0] = (acc + b_ref[...]).astype(o_ref.dtype)


def conv_norm_forward(x, weight, bias, *, stride=1, padding=None, dilation=1,
                      compute_dtype=None, l_tile_max=1024):
    """Pallas implementation of ConvNorm.forward (nn.Conv1d, NCL layout)."""
    B, C_in, L = x.shape
    C_out, C_in_w, K = weight.shape
    assert C_in == C_in_w
    if padding is None:
        assert K % 2 == 1
        padding = int(dilation * (K - 1) / 2)

    out_dtype = x.dtype
    compute_dtype = jnp.dtype(x.dtype if compute_dtype is None else compute_dtype)
    s = int(stride)
    d = int(dilation)

    # ---- wrapper glue: O(1)x passes over x (no K-fold im2col) ---------------
    Lp = L + 2 * padding
    L_out = (Lp - d * (K - 1) - 1) // s + 1
    assert L_out > 0

    # Phase decomposition: xph[b, p, c, t] = x_padded[b, c, t*s + p], so every
    # tap k becomes a unit-stride lane slice (phase (k*d)%s, offset (k*d)//s).
    T = pl.cdiv(Lp, s)
    xp = jnp.pad(x, ((0, 0), (0, 0), (padding, padding + T * s - Lp)))
    xph = jnp.transpose(xp.reshape(B, C_in, T, s), (0, 3, 1, 2))  # (B, s, C_in, T)
    xph = xph.astype(compute_dtype)

    halo_t = (d * (K - 1)) // s            # max per-tap offset within a tile
    halo = max(halo_t, 1)

    # ---- VMEM-budget-aware tile size & generation-aware limit ---------------
    in_b = compute_dtype.itemsize
    out_b = jnp.dtype(out_dtype).itemsize
    try:
        phys_vmem = int(pltpu.get_tpu_info().vmem_capacity_bytes)
    except Exception:
        phys_vmem = 64 * 1024 * 1024       # conservative (v7x per-core VMEM)
    vmem_limit = min(phys_vmem * 3 // 4, 100 * 1024 * 1024)

    fixed = K * C_out * C_in * in_b                          # resident weight
    fixed += 2 * (C_out * 4 + s * C_in * halo * in_b)        # bias + halo tiles
    per_col = (3 * s * C_in * in_b                           # x (2 bufs) + scratch
               + 2 * C_out * out_b                           # out (2 bufs)
               + C_out * 4)                                  # f32 accumulator
    budget = int(vmem_limit * 0.85) - fixed
    l_tile_max = max(128, (int(l_tile_max) // 128) * 128)    # keep lane-dense
    L_tile = max(128, min(l_tile_max,
                          128 * pl.cdiv(L_out, 128),
                          (max(budget, 0) // max(per_col, 1) // 128) * 128))
    n_l = pl.cdiv(L_out, L_tile)
    assert halo < L_tile, "dilation*(K-1)//stride must be smaller than L_tile"

    # Per-tile halo: the first `halo` t-columns of the NEXT tile (zeros past end).
    T_big = (n_l + 1) * L_tile
    xph_big = jnp.pad(xph, ((0, 0), (0, 0), (0, 0), (0, T_big - T)))
    halo_arr = xph_big.reshape(B, s, C_in, n_l + 1, L_tile)[:, :, :, 1:, :halo]
    halo_arr = jnp.transpose(halo_arr, (0, 3, 1, 2, 4)).reshape(
        B * n_l, s, C_in, halo)

    # Per-tap weights (K, C_out, C_in); f32 bias as (C_out, 1).
    w_taps = jnp.transpose(weight, (2, 0, 1)).astype(compute_dtype)
    b2d = bias.reshape(C_out, 1).astype(jnp.float32)

    cost = pl.CostEstimate(
        flops=2 * B * n_l * C_out * K * C_in * L_tile,
        transcendentals=0,
        bytes_accessed=(xph.size * in_b + halo_arr.size * in_b
                        + w_taps.size * in_b + b2d.size * 4
                        + B * C_out * L_out * out_b),
    )

    kernel = partial(_conv1d_halo_kernel, K=K, stride=s, dilation=d,
                     l_tile=L_tile)

    def build(single_buffer_consts):
        const_kw = ({"pipeline_mode": pl.Buffered(1)}
                    if single_buffer_consts else {})
        return pl.pallas_call(
            kernel,
            out_shape=jax.ShapeDtypeStruct((B, C_out, L_out), out_dtype),
            grid_spec=pltpu.PrefetchScalarGridSpec(
                num_scalar_prefetch=0,
                grid=(B, n_l),
                in_specs=[
                    pl.BlockSpec((1, s, C_in, L_tile),
                                 lambda b, l: (b, 0, 0, l)),
                    pl.BlockSpec((1, s, C_in, halo),
                                 lambda b, l: (b * n_l + l, 0, 0, 0)),
                    pl.BlockSpec((K, C_out, C_in),
                                 lambda b, l: (0, 0, 0), **const_kw),
                    pl.BlockSpec((C_out, 1),
                                 lambda b, l: (0, 0), **const_kw),
                ],
                out_specs=pl.BlockSpec((1, C_out, L_tile),
                                       lambda b, l: (b, 0, l)),
                scratch_shapes=[pltpu.VMEM((s, C_in, L_tile + halo),
                                           compute_dtype)],
            ),
            compiler_params=pltpu.CompilerParams(
                dimension_semantics=("parallel", "parallel"),
                vmem_limit_bytes=vmem_limit,
            ),
            cost_estimate=cost,
        )

    try:
        # Constant-index weight/bias: single-buffer to halve resident VMEM.
        return build(True)(xph, halo_arr, w_taps, b2d)
    except Exception:
        # Fallback for Pallas builds without BlockSpec.pipeline_mode support.
        return build(False)(xph, halo_arr, w_taps, b2d)


def init_conv_norm_params(key, in_channels, out_channels, kernel_size,
                          w_init_gain="linear"):
    """Deterministic init matching ConvNorm.__init__ (xavier_uniform weight,
    PyTorch-default uniform bias)."""
    kw, kb = jax.random.split(key)
    gain = 1.0  # calculate_gain('linear') == 1.0
    fan_in = in_channels * kernel_size
    fan_out = out_channels * kernel_size
    a = gain * sqrt(6.0 / (fan_in + fan_out))
    weight = jax.random.uniform(
        kw, (out_channels, in_channels, kernel_size),
        minval=-a, maxval=a, dtype=jnp.float32)
    bound = 1.0 / sqrt(fan_in)
    bias = jax.random.uniform(
        kb, (out_channels,), minval=-bound, maxval=bound, dtype=jnp.float32)
    return weight, bias


if __name__ == "__main__":
    root = jax.random.PRNGKey(0)

    def run_case(key, *, B, C_in, C_out, L, K, stride, dilation, padding=None,
                 compute_dtype=None, atol=1e-4, rtol=1e-4):
        k_x, k_p = jax.random.split(key)
        x = jax.random.normal(k_x, (B, C_in, L), dtype=jnp.float32)
        weight, bias = init_conv_norm_params(k_p, C_in, C_out, K)
        # Round test inputs to bf16-representable values so the MXU's bf16
        # multiplier passes (both in the kernel and in the XLA reference) are
        # exact and the correctness check can use a tight tolerance.
        x = x.astype(jnp.bfloat16).astype(jnp.float32)
        weight = weight.astype(jnp.bfloat16).astype(jnp.float32)

        out = conv_norm_forward(x, weight, bias, stride=stride, padding=padding,
                                dilation=dilation, compute_dtype=compute_dtype)
        out = jax.block_until_ready(out)

        pad = padding if padding is not None else int(dilation * (K - 1) / 2)
        ref = jax.lax.conv_general_dilated(
            x, weight, window_strides=(stride,), padding=[(pad, pad)],
            rhs_dilation=(dilation,),
            dimension_numbers=("NCH", "OIH", "NCH"),
            preferred_element_type=jnp.float32,
        ) + bias[None, :, None]

        assert out.shape == ref.shape, (out.shape, ref.shape)
        err = float(jnp.max(jnp.abs(out - ref)))
        assert jnp.allclose(out, ref, atol=atol, rtol=rtol), err

    keys = jax.random.split(root, 4)
    # f32 paths: default, strided, dilated.
    run_case(keys[0], B=2, C_in=4, C_out=8, L=16, K=3, stride=1, dilation=1)
    run_case(keys[1], B=2, C_in=4, C_out=8, L=16, K=5, stride=2, dilation=1)
    run_case(keys[2], B=1, C_in=4, C_out=8, L=16, K=3, stride=1, dilation=2)
    # bf16 compute path (halves HBM/VMEM traffic; f32 accumulate & f32 output).
    run_case(keys[3], B=2, C_in=4, C_out=8, L=16, K=3, stride=1, dilation=1,
             compute_dtype=jnp.bfloat16)

    print("KERNEL_OK")
</pallas_src>

<mosaic_0001>
module attributes {stable_mosaic.version = 11 : i64} {
  func.func @_conv1d_halo_kernel(%arg0: i32, %arg1: i32, %arg2: memref<1x1x4x128xf32, #tpu.memory_space<vmem>>, %arg3: memref<1x1x4x2xf32, #tpu.memory_space<vmem>>, %arg4: memref<3x8x4xf32, #tpu.memory_space<vmem>>, %arg5: memref<8x1xf32, #tpu.memory_space<vmem>>, %arg6: memref<1x8x128xf32, #tpu.memory_space<vmem>>, %arg7: memref<1x4x130xf32, #tpu.memory_space<vmem>>) attributes {dimension_semantics = [#tpu.dimension_semantics<parallel>, #tpu.dimension_semantics<parallel>], iteration_bounds = array<i64: 2, 1>, scalar_prefetch = 0 : i64, scratch_operands = 1 : i64, tpu.core_type = #tpu.core_type<tc>, window_params = [{transform_indices = @transform_0, window_bounds = array<i64: 1, 1, 4, 128>}, {transform_indices = @transform_1, window_bounds = array<i64: 1, 1, 4, 2>}, {pipeline_mode = #tpu.pipeline_mode<synchronous>, transform_indices = @transform_2, window_bounds = array<i64: 3, 8, 4>}, {pipeline_mode = #tpu.pipeline_mode<synchronous>, transform_indices = @transform_3, window_bounds = array<i64: 8, 1>}, {transform_indices = @transform_4, window_bounds = array<i64: 1, 8, 128>}]} {
    %c0 = arith.constant 0 : index
    %c0_0 = arith.constant 0 : index
    %c0_1 = arith.constant 0 : index
    %c0_2 = arith.constant 0 : index
    %0 = vector.load %arg2[%c0, %c0_0, %c0_1, %c0_2] : memref<1x1x4x128xf32, #tpu.memory_space<vmem>>, vector<1x1x4x128xf32>
    %1 = vector.shape_cast %0 : vector<1x1x4x128xf32> to vector<1x4x128xf32>
    %c0_3 = arith.constant 0 : index
    %c0_4 = arith.constant 0 : index
    %c0_5 = arith.constant 0 : index
    %2 = vector.load %arg7[%c0_3, %c0_4, %c0_5] : memref<1x4x130xf32, #tpu.memory_space<vmem>>, vector<1x4x128xf32>
    tpu.vector_store %arg7[%c0_3, %c0_4, %c0_5], %1 {strides = array<i32>} : memref<1x4x130xf32, #tpu.memory_space<vmem>>, vector<1x4x128xf32>,
    %c0_6 = arith.constant 0 : index
    %c0_7 = arith.constant 0 : index
    %c0_8 = arith.constant 0 : index
    %c0_9 = arith.constant 0 : index
    %3 = vector.load %arg3[%c0_6, %c0_7, %c0_8, %c0_9] : memref<1x1x4x2xf32, #tpu.memory_space<vmem>>, vector<1x1x4x2xf32>
    %4 = vector.shape_cast %3 : vector<1x1x4x2xf32> to vector<1x4x2xf32>
    %c0_10 = arith.constant 0 : index
    %c0_11 = arith.constant 0 : index
    %c128 = arith.constant 128 : index
    %5 = vector.load %arg7[%c0_10, %c0_11, %c128] : memref<1x4x130xf32, #tpu.memory_space<vmem>>, vector<1x4x2xf32>
    tpu.vector_store %arg7[%c0_10, %c0_11, %c128], %4 {strides = array<i32>} : memref<1x4x130xf32, #tpu.memory_space<vmem>>, vector<1x4x2xf32>,
    %cst = arith.constant 0.000000e+00 : f32
    %6 = vector.broadcast %cst : f32 to vector<8x128xf32>
    %c0_12 = arith.constant 0 : index
    %c0_13 = arith.constant 0 : index
    %c0_14 = arith.constant 0 : index
    %7 = vector.load %arg7[%c0_12, %c0_13, %c0_14] : memref<1x4x130xf32, #tpu.memory_space<vmem>>, vector<1x4x128xf32>
    %8 = vector.shape_cast %7 : vector<1x4x128xf32> to vector<4x128xf32>
    %c0_15 = arith.constant 0 : index
    %c0_16 = arith.constant 0 : index
    %c0_17 = arith.constant 0 : index
    %9 = vector.load %arg4[%c0_15, %c0_16, %c0_17] : memref<3x8x4xf32, #tpu.memory_space<vmem>>, vector<1x8x4xf32>
    %10 = vector.shape_cast %9 : vector<1x8x4xf32> to vector<8x4xf32>
    %cst_18 = arith.constant dense<0.000000e+00> : vector<8x128xf32>
    %11 = tpu.matmul %10, %8, %cst_18 {dimension_numbers = #tpu.dot_dimension_numbers<[1], [0], [0], [1], [0, 0, 1, 1], [], []>} : vector<8x4xf32>, vector<4x128xf32>, vector<8x128xf32> -> vector<8x128xf32>
    %12 = arith.addf %6, %11 : vector<8x128xf32>
    %c0_19 = arith.constant 0 : index
    %c0_20 = arith.constant 0 : index
    %c1 = arith.constant 1 : index
    %13 = vector.load %arg7[%c0_19, %c0_20, %c1] : memref<1x4x130xf32, #tpu.memory_space<vmem>>, vector<1x4x128xf32>
    %14 = vector.shape_cast %13 : vector<1x4x128xf32> to vector<4x128xf32>
    %c1_21 = arith.constant 1 : index
    %c0_22 = arith.constant 0 : index
    %c0_23 = arith.constant 0 : index
    %15 = vector.load %arg4[%c1_21, %c0_22, %c0_23] : memref<3x8x4xf32, #tpu.memory_space<vmem>>, vector<1x8x4xf32>
    %16 = vector.shape_cast %15 : vector<1x8x4xf32> to vector<8x4xf32>
    %cst_24 = arith.constant dense<0.000000e+00> : vector<8x128xf32>
    %17 = tpu.matmul %16, %14, %cst_24 {dimension_numbers = #tpu.dot_dimension_numbers<[1], [0], [0], [1], [0, 0, 1, 1], [], []>} : vector<8x4xf32>, vector<4x128xf32>, vector<8x128xf32> -> vector<8x128xf32>
    %18 = arith.addf %12, %17 : vector<8x128xf32>
    %c0_25 = arith.constant 0 : index
    %c0_26 = arith.constant 0 : index
    %c2 = arith.constant 2 : index
    %19 = vector.load %arg7[%c0_25, %c0_26, %c2] : memref<1x4x130xf32, #tpu.memory_space<vmem>>, vector<1x4x128xf32>
    %20 = vector.shape_cast %19 : vector<1x4x128xf32> to vector<4x128xf32>
    %c2_27 = arith.constant 2 : index
    %c0_28 = arith.constant 0 : index
    %c0_29 = arith.constant 0 : index
    %21 = vector.load %arg4[%c2_27, %c0_28, %c0_29] : memref<3x8x4xf32, #tpu.memory_space<vmem>>, vector<1x8x4xf32>
    %22 = vector.shape_cast %21 : vector<1x8x4xf32> to vector<8x4xf32>
    %cst_30 = arith.constant dense<0.000000e+00> : vector<8x128xf32>
    %23 = tpu.matmul %22, %20, %cst_30 {dimension_numbers = #tpu.dot_dimension_numbers<[1], [0], [0], [1], [0, 0, 1, 1], [], []>} : vector<8x4xf32>, vector<4x128xf32>, vector<8x128xf32> -> vector<8x128xf32>
    %24 = arith.addf %18, %23 : vector<8x128xf32>
    %c0_31 = arith.constant 0 : index
    %c0_32 = arith.constant 0 : index
    %25 = vector.load %arg5[%c0_31, %c0_32] : memref<8x1xf32, #tpu.memory_space<vmem>>, vector<8x1xf32>
    %26 = vector.broadcast %25 : vector<8x1xf32> to vector<8x128xf32>
    %27 = arith.addf %24, %26 : vector<8x128xf32>
    %c0_33 = arith.constant 0 : index
    %c0_34 = arith.constant 0 : index
    %c0_35 = arith.constant 0 : index
    %28 = vector.load %arg6[%c0_33, %c0_34, %c0_35] : memref<1x8x128xf32, #tpu.memory_space<vmem>>, vector<1x8x128xf32>
    %29 = vector.shape_cast %28 : vector<1x8x128xf32> to vector<8x128xf32>
    %30 = vector.shape_cast %27 : vector<8x128xf32> to vector<1x8x128xf32>
    tpu.vector_store %arg6[%c0_33, %c0_34, %c0_35], %30 {strides = array<i32>} : memref<1x8x128xf32, #tpu.memory_space<vmem>>, vector<1x8x128xf32>,
    return
  }
  func.func @transform_0(%arg0: i32, %arg1: i32) -> (i32, i32, i32, i32) {
    %c0_i32 = arith.constant 0 : i32
    %c0_i32_0 = arith.constant 0 : i32
    %c0_i32_1 = arith.constant 0 : i32
    return %arg0, %c0_i32, %c0_i32_0, %arg1 : i32, i32, i32, i32
  }
  func.func @transform_1(%arg0: i32, %arg1: i32) -> (i32, i32, i32, i32) {
    %c1_i32 = arith.constant 1 : i32
    %0 = arith.muli %arg0, %c1_i32 : i32
    %1 = arith.addi %0, %arg1 : i32
    %c0_i32 = arith.constant 0 : i32
    %c0_i32_0 = arith.constant 0 : i32
    %c0_i32_1 = arith.constant 0 : i32
    %c0_i32_2 = arith.constant 0 : i32
    return %1, %c0_i32, %c0_i32_0, %c0_i32_1 : i32, i32, i32, i32
  }
  func.func @transform_2(%arg0: i32, %arg1: i32) -> (i32, i32, i32) {
    %c0_i32 = arith.constant 0 : i32
    %c0_i32_0 = arith.constant 0 : i32
    %c0_i32_1 = arith.constant 0 : i32
    %c0_i32_2 = arith.constant 0 : i32
    return %c0_i32, %c0_i32_0, %c0_i32_1 : i32, i32, i32
  }
  func.func @transform_3(%arg0: i32, %arg1: i32) -> (i32, i32) {
    %c0_i32 = arith.constant 0 : i32
    %c0_i32_0 = arith.constant 0 : i32
    %c0_i32_1 = arith.constant 0 : i32
    return %c0_i32, %c0_i32_0 : i32, i32
  }
  func.func @transform_4(%arg0: i32, %arg1: i32) -> (i32, i32, i32) {
    %c0_i32 = arith.constant 0 : i32
    %c0_i32_0 = arith.constant 0 : i32
    return %arg0, %c0_i32, %arg1 : i32, i32, i32
  }
}

module attributes {stable_mosaic.version = 11 : i64} {
  func.func @_conv1d_halo_kernel(%arg0: i32, %arg1: i32, %arg2: memref<1x1x4x128xf32, #tpu.memory_space<vmem>>, %arg3: memref<1x1x4x2xf32, #tpu.memory_space<vmem>>, %arg4: memref<3x8x4xf32, #tpu.memory_space<vmem>>, %arg5: memref<8x1xf32, #tpu.memory_space<vmem>>, %arg6: memref<1x8x128xf32, #tpu.memory_space<vmem>>, %arg7: memref<1x4x130xf32, #tpu.memory_space<vmem>>) attributes {dimension_semantics = [#tpu.dimension_semantics<parallel>, #tpu.dimension_semantics<parallel>], iteration_bounds = array<i64: 2, 1>, scalar_prefetch = 0 : i64, scratch_operands = 1 : i64, tpu.core_type = #tpu.core_type<tc>, window_params = [{transform_indices = @transform_0, window_bounds = array<i64: 1, 1, 4, 128>}, {transform_indices = @transform_1, window_bounds = array<i64: 1, 1, 4, 2>}, {pipeline_mode = #tpu.pipeline_mode<synchronous>, transform_indices = @transform_2, window_bounds = array<i64: 3, 8, 4>}, {pipeline_mode = #tpu.pipeline_mode<synchronous>, transform_indices = @transform_3, window_bounds = array<i64: 8, 1>}, {transform_indices = @transform_4, window_bounds = array<i64: 1, 8, 128>}]} {
    %c0 = arith.constant 0 : index
    %c0_0 = arith.constant 0 : index
    %c0_1 = arith.constant 0 : index
    %c0_2 = arith.constant 0 : index
    %0 = vector.load %arg2[%c0, %c0_0, %c0_1, %c0_2] : memref<1x1x4x128xf32, #tpu.memory_space<vmem>>, vector<1x1x4x128xf32>
    %1 = vector.shape_cast %0 : vector<1x1x4x128xf32> to vector<1x4x128xf32>
    %c0_3 = arith.constant 0 : index
    %c0_4 = arith.constant 0 : index
    %c0_5 = arith.constant 0 : index
    %2 = vector.load %arg7[%c0_3, %c0_4, %c0_5] : memref<1x4x130xf32, #tpu.memory_space<vmem>>, vector<1x4x128xf32>
    tpu.vector_store %arg7[%c0_3, %c0_4, %c0_5], %1 {strides = array<i32>} : memref<1x4x130xf32, #tpu.memory_space<vmem>>, vector<1x4x128xf32>,
    %c0_6 = arith.constant 0 : index
    %c0_7 = arith.constant 0 : index
    %c0_8 = arith.constant 0 : index
    %c0_9 = arith.constant 0 : index
    %3 = vector.load %arg3[%c0_6, %c0_7, %c0_8, %c0_9] : memref<1x1x4x2xf32, #tpu.memory_space<vmem>>, vector<1x1x4x2xf32>
    %4 = vector.shape_cast %3 : vector<1x1x4x2xf32> to vector<1x4x2xf32>
    %c0_10 = arith.constant 0 : index
    %c0_11 = arith.constant 0 : index
    %c128 = arith.constant 128 : index
    %5 = vector.load %arg7[%c0_10, %c0_11, %c128] : memref<1x4x130xf32, #tpu.memory_space<vmem>>, vector<1x4x2xf32>
    tpu.vector_store %arg7[%c0_10, %c0_11, %c128], %4 {strides = array<i32>} : memref<1x4x130xf32, #tpu.memory_space<vmem>>, vector<1x4x2xf32>,
    %cst = arith.constant 0.000000e+00 : f32
    %6 = vector.broadcast %cst : f32 to vector<8x128xf32>
    %c0_12 = arith.constant 0 : index
    %c0_13 = arith.constant 0 : index
    %c0_14 = arith.constant 0 : index
    %7 = vector.load %arg7[%c0_12, %c0_13, %c0_14] : memref<1x4x130xf32, #tpu.memory_space<vmem>>, vector<1x4x128xf32>
    %8 = vector.shape_cast %7 : vector<1x4x128xf32> to vector<4x128xf32>
    %c0_15 = arith.constant 0 : index
    %c0_16 = arith.constant 0 : index
    %c0_17 = arith.constant 0 : index
    %9 = vector.load %arg4[%c0_15, %c0_16, %c0_17] : memref<3x8x4xf32, #tpu.memory_space<vmem>>, vector<1x8x4xf32>
    %10 = vector.shape_cast %9 : vector<1x8x4xf32> to vector<8x4xf32>
    %cst_18 = arith.constant dense<0.000000e+00> : vector<8x128xf32>
    %11 = tpu.matmul %10, %8, %cst_18 {dimension_numbers = #tpu.dot_dimension_numbers<[1], [0], [0], [1], [0, 0, 1, 1], [], []>} : vector<8x4xf32>, vector<4x128xf32>, vector<8x128xf32> -> vector<8x128xf32>
    %12 = arith.addf %6, %11 : vector<8x128xf32>
    %c0_19 = arith.constant 0 : index
    %c0_20 = arith.constant 0 : index
    %c1 = arith.constant 1 : index
    %13 = vector.load %arg7[%c0_19, %c0_20, %c1] : memref<1x4x130xf32, #tpu.memory_space<vmem>>, vector<1x4x128xf32>
    %14 = vector.shape_cast %13 : vector<1x4x128xf32> to vector<4x128xf32>
    %c1_21 = arith.constant 1 : index
    %c0_22 = arith.constant 0 : index
    %c0_23 = arith.constant 0 : index
    %15 = vector.load %arg4[%c1_21, %c0_22, %c0_23] : memref<3x8x4xf32, #tpu.memory_space<vmem>>, vector<1x8x4xf32>
    %16 = vector.shape_cast %15 : vector<1x8x4xf32> to vector<8x4xf32>
    %cst_24 = arith.constant dense<0.000000e+00> : vector<8x128xf32>
    %17 = tpu.matmul %16, %14, %cst_24 {dimension_numbers = #tpu.dot_dimension_numbers<[1], [0], [0], [1], [0, 0, 1, 1], [], []>} : vector<8x4xf32>, vector<4x128xf32>, vector<8x128xf32> -> vector<8x128xf32>
    %18 = arith.addf %12, %17 : vector<8x128xf32>
    %c0_25 = arith.constant 0 : index
    %c0_26 = arith.constant 0 : index
    %c2 = arith.constant 2 : index
    %19 = vector.load %arg7[%c0_25, %c0_26, %c2] : memref<1x4x130xf32, #tpu.memory_space<vmem>>, vector<1x4x128xf32>
    %20 = vector.shape_cast %19 : vector<1x4x128xf32> to vector<4x128xf32>
    %c2_27 = arith.constant 2 : index
    %c0_28 = arith.constant 0 : index
    %c0_29 = arith.constant 0 : index
    %21 = vector.load %arg4[%c2_27, %c0_28, %c0_29] : memref<3x8x4xf32, #tpu.memory_space<vmem>>, vector<1x8x4xf32>
    %22 = vector.shape_cast %21 : vector<1x8x4xf32> to vector<8x4xf32>
    %cst_30 = arith.constant dense<0.000000e+00> : vector<8x128xf32>
    %23 = tpu.matmul %22, %20, %cst_30 {dimension_numbers = #tpu.dot_dimension_numbers<[1], [0], [0], [1], [0, 0, 1, 1], [], []>} : vector<8x4xf32>, vector<4x128xf32>, vector<8x128xf32> -> vector<8x128xf32>
    %24 = arith.addf %18, %23 : vector<8x128xf32>
    %c0_31 = arith.constant 0 : index
    %c0_32 = arith.constant 0 : index
    %25 = vector.load %arg5[%c0_31, %c0_32] : memref<8x1xf32, #tpu.memory_space<vmem>>, vector<8x1xf32>
    %26 = vector.broadcast %25 : vector<8x1xf32> to vector<8x128xf32>
    %27 = arith.addf %24, %26 : vector<8x128xf32>
    %c0_33 = arith.constant 0 : index
    %c0_34 = arith.constant 0 : index
    %c0_35 = arith.constant 0 : index
    %28 = vector.load %arg6[%c0_33, %c0_34, %c0_35] : memref<1x8x128xf32, #tpu.memory_space<vmem>>, vector<1x8x128xf32>
    %29 = vector.shape_cast %28 : vector<1x8x128xf32> to vector<8x128xf32>
    %30 = vector.shape_cast %27 : vector<8x128xf32> to vector<1x8x128xf32>
    tpu.vector_store %arg6[%c0_33, %c0_34, %c0_35], %30 {strides = array<i32>} : memref<1x8x128xf32, #tpu.memory_space<vmem>>, vector<1x8x128xf32>,
    return
  }
  func.func @transform_0(%arg0: i32, %arg1: i32) -> (i32, i32, i32, i32) {
    %c0_i32 = arith.constant 0 : i32
    %c0_i32_0 = arith.constant 0 : i32
    %c0_i32_1 = arith.constant 0 : i32
    return %arg0, %c0_i32, %c0_i32_0, %arg1 : i32, i32, i32, i32
  }
  func.func @transform_1(%arg0: i32, %arg1: i32) -> (i32, i32, i32, i32) {
    %c1_i32 = arith.constant 1 : i32
    %0 = arith.muli %arg0, %c1_i32 : i32
    %1 = arith.addi %0, %arg1 : i32
    %c0_i32 = arith.constant 0 : i32
    %c0_i32_0 = arith.constant 0 : i32
    %c0_i32_1 = arith.constant 0 : i32
    %c0_i32_2 = arith.constant 0 : i32
    return %1, %c0_i32, %c0_i32_0, %c0_i32_1 : i32, i32, i32, i32
  }
  func.func @transform_2(%arg0: i32, %arg1: i32) -> (i32, i32, i32) {
    %c0_i32 = arith.constant 0 : i32
    %c0_i32_0 = arith.constant 0 : i32
    %c0_i32_1 = arith.constant 0 : i32
    %c0_i32_2 = arith.constant 0 : i32
    return %c0_i32, %c0_i32_0, %c0_i32_1 : i32, i32, i32
  }
  func.func @transform_3(%arg0: i32, %arg1: i32) -> (i32, i32) {
    %c0_i32 = arith.constant 0 : i32
    %c0_i32_0 = arith.constant 0 : i32
    %c0_i32_1 = arith.constant 0 : i32
    return %c0_i32, %c0_i32_0 : i32, i32
  }
  func.func @transform_4(%arg0: i32, %arg1: i32) -> (i32, i32, i32) {
    %c0_i32 = arith.constant 0 : i32
    %c0_i32_0 = arith.constant 0 : i32
    return %arg0, %c0_i32, %arg1 : i32, i32, i32
  }
}

</mosaic_0001>

<bundles_post_ra>
// kernel: tpu_custom_call.1
= control target key start
LH: loop header
LB: loop body
LE: loop exit
PB: predicated region body
PF: predicated region fallthrough
CT: control target
= control target key end

     0   :  { %9 = vsyncpa [#allocation4], 0  ;;  %s956_s0 = inlined_call_operand.vmem [shape: f32[2,1,4,18], index: 0, kind: input, shape index: {}]   ;;  %s957_s1 = inlined_call_operand.vmem [shape: f32[2,1,4,2], index: 1, kind: input, shape index: {}]   ;;  %s958_s2 = inlined_call_operand.vmem [shape: f32[3,8,4], index: 2, kind: input, shape index: {}]   ;;  %s959_s3 = inlined_call_operand.vmem [shape: f32[8,1], index: 3, kind: input, shape index: {}]   ;;  %s960_s4 = inlined_call_operand.hbm [shape: f32[2,8,16], index: 4, kind: output, shape index: {}]  }
   0x1   :  { %11 = vsyncpa [#allocation4 + $0x1], 0  ;;  %s820_s15 = smov 0   ;;  %s822_s16 = smov 0  }
   0x2   :  { %s824_s17 = smov 0   ;;  %s826_s18 = smov 0  }
   0x3   :  { %s828_s19 = smov 0   ;;  %s830_s20 = smov 0  }
   0x4 LB: > { %s606_s21 = sadd.s32 4294967295, %s787_s20   ;;  %s607_s22 = sadd.s32 4294967294, %s787_s20   ;;  %s787_s20 = sphi %s830_s20, %s17_s20   ;;  %s783_s19 = sphi %s828_s19, %s967_s19   ;;  %s779_s18 = sphi %s826_s18, %s966_s18   ;;  %s775_s17 = sphi %s824_s17, %s965_s17   ;;  %s771_s16 = sphi %s822_s16, %s964_s16   ;;  %s767_s15 = sphi %s820_s15, %s963_s15  }
   0x5   : > { %s29_s23 = sadd.s32 1, %s783_s19  ;;  %s136_s24 = sadd.s32 1, %s775_s17 }
   0x6   : > { %p31_p0 = scmp.ge.s32.totalorder %s29_s23, 2  ;;  %p146_p1 = scmp.ne.s32.totalorder %s775_s17, %s771_s16 }
   0x7   : > { %p147_p2 = scmp.eq.s32.totalorder %s606_s21, 1  ;;  %p152_p3 = scmp.ne.s32.totalorder %s771_s16, %s767_s15 }
   0x8   : > { %s969_s23 = smov (%p31_p0, %s29_s23), 0  ;;  %p153_p5 = scmp.eq.s32.totalorder %s607_s22, 1 }
   0x9   : > { %p860_p4 = por %p147_p2, %p146_p1  ;;  %s131_s26 = ssub.s32 %s783_s19, %s969_s23 }
   0xa   : > { %p610_p6 = scmp.ge.s32.totalorder %s787_s20, 1  ;;  %p134_p7 = scmp.eq.s32.totalorder %s131_s26, 0 }
   0xb   : > { %p867_p8 = por %p153_p5, %p152_p3  ;;  %p196_p9 = scmp.lt.s32.totalorder %s787_s20, 3 }
   0xc   : > { %s873_s28 = scalar_select %p134_p7, %s775_s17, %s136_s24  }
   0xd   : > { %p197_p10 = pnand %p610_p6, %p196_p9 }
   0xe   : > { %p229_p11 = scmp.lt.s32.totalorder (!%p197_p10), %s779_s18, 1  ;;  %vm245_vm0 = vcmask (!%p197_p10), 11264   ;;  %v789_v2 = vmov (!%p197_p10), 0.0   ;;  %vm790_vm1 = vmmov (!%p197_p10), 0   ;;  %vm264_vm2 = vcmask (!%p197_p10), 1043456   ;;  %v248_v6 = vld [vmem:[%s958_s2] sm:$0xff] (!%p197_p10) }
   0xf   : > { %200 = sbr.rel (%p197_p10) target bundleno = 391 (0x187), region = 36  ;;  %632 = vmatprep.subr.mxu0 (!%p197_p10), %v789_v2  ;;  %637 = vmatprep.subr.mxu1 (!%p197_p10), %v789_v2  ;;  %v791_v3 = vmov (!%p197_p10), 0   ;;  %vm260_vm3 = vcmask (!%p197_p10), 31744   ;;  %s792_s13 = smov (!%p197_p10), 126   ;;  %v500_v8 = vld [vmem:[%s959_s3] sm:$0xff] (!%p197_p10)  ;;  %vm258_vm4 = vcmask (!%p197_p10), 1039360  }
  0x10   : > { %634 = vmatprep.mubr.msk.f32.mxu0 (!%p197_p10), %vm790_vm1, %v789_v2  ;;  %639 = vmatprep.mubr.msk.f32.mxu1 (!%p197_p10), %vm790_vm1, %v789_v2  ;;  %s793_s14 = smov (!%p197_p10), 127   ;;  %vm422_vm5 = vcmask (!%p197_p10), 1031168   ;;  %v614_v13 = vld [vmem:[%s958_s2 + $0x8] sm:$0xff] (!%p197_p10)  ;;  %v619_v16 = vld [vmem:[%s958_s2 + $0x10] sm:$0xff] (!%p197_p10)  ;;  %s226_s5 = sand.u32 (!%p197_p10), 1, %s771_s16  }
  0x11   : > { %707 = vset.pattern.permute.xlu0 (!%p197_p10), %v791_v3  ;;  %s611_s6 = sshll.u32 (!%p197_p10), %s226_s5, 3 }
  0x12   : > { %s228_s8 = scalar_lea.vmem (!%p197_p10), [#allocation3], %s611_s6 }
  0x13   : > { %s523_s9 = sshll.u32 (!%p197_p10), %s228_s8, 4  ;;  %s911_s9 = int_to_ptr.vmem [resolvable:$true] %s523_s9 }
  0x16   : > { %s230_s29 = scalar_select %p229_p11, %s779_s18, 1 }
  0x18   : > { %s612_s30 = sshll.u32 %s230_s29, 2 }
  0x19   : > { %s235_s7 = scalar_lea.vmem %s956_s0, %s612_s30  ;;  %s240_s10 = scalar_lea.vmem %s957_s1, %s612_s30 }
  0x1a   : > { %v242_v0 = vld [vmem:[%s235_s7] sm:$0xf]  ;;  %s623_s7 = sshll.u32 %s779_s18, 7  ;;  %s794_s18 = smov [#allocation3]  }
  0x1b   : > { %v244_v1 = vld [vmem:[%s240_s10] sm:$0xf]  ;;  %243 = vst [vmem:[#allocation2] sm:$0xf] %v242_v0  ;;  %s909_s12 = scalar_lea.hbm %s960_s4, %s623_s7  ;;  %s713_s21 = sshll.u32 %s794_s18, 4  ;;  %s714_s21 = int_to_ptr.vmem [resolvable:$false] %s713_s21 }
  0x1c   : > { %246 = vst.msk [vmem:[#allocation2 + $0x4] sm:$0xf] %vm245_vm0, %v244_v1  ;;  %s715_s22 = scalar_lea.vmem %s714_s21, 256  ;;  %p716_p1 = scmp.lt.s32.totalorder %s911_s9, %s714_s21 }
  0x22   : > { %v247_v5 = vld [vmem:[#allocation2] sm:$0xf] }
  0x23   : > { %v413_v4 = vld [vmem:[#allocation2] sm:$0xff]  ;;  %638 = vmatpush3.msk.msra.mxu1 %vm264_vm2, %v247_v5 }
  0x24   : > { %418 = vrot.lane.b32.xlu1 %v413_v4, %s792_s13  ;;  %v417_v7 = vcombine.high %v413_v4, %v413_v4  ;;  %254 = vrot.lane.b32.xlu0 %v413_v4, %s793_s14 }
  0x25   : > { %640 = vmatmul.mubr.msk.f32.vlgmr.msra.gmra.mrb[0].mxu1 %vm260_vm3, %v248_v6 }
  0x28   : > { %420 = vrot.lane.b32.xlu1 %v417_v7, %s792_s13  ;;  %256 = vrot.lane.b32.xlu0 %v417_v7, %s793_s14  ;;  %s509_s13 = scalar_lea.sflag [#allocation4], %s226_s5  ;;  %s709_s14 = scalar_lea.vmem %s911_s9, 128 }
  0x29   : > { %p710_p12 = scmp.ne.s32.totalorder %s911_s9, %s709_s14  ;;  %p717_p2 = scmp.lt.s32.totalorder %s715_s22, %s709_s14 }
  0x2b   : > { %p711_p13 = pnand %p710_p12, %p860_p4  ;;  %p718_p3 = por %p717_p2, %p716_p1 }
  0x2c   : > { %503 = vperm.xlu0 %707, %v500_v8  }
  0x2d   : > { %p712_p0 = pneg %p711_p13 }
  0x2f   : > { %p719_p5 = pnand %p718_p3, %p712_p0 }
  0x96   : > { %v419_v9 = vpop.permute.xlu1 %418  ;;  %v255_v10 = vpop.permute.xlu0 %254 }
  0x9a   : > { %v421_v11 = vpop.permute.xlu1 %420  ;;  %v257_v12 = vpop.permute.xlu0 %256 }
  0x9b   : > { %v259_v14 = vsel %vm258_vm4, %v255_v10, %v257_v12  ;;  %v423_v15 = vsel %vm422_vm5, %v419_v9, %v421_v11 }
  0x9c   : > { %633 = vmatpush3.msk.msra.mxu0 %vm264_vm2, %v259_v14 }
  0x9d   : > { %635 = vmatmul.mubr.msk.f32.vlgmr.msra.gmra.mrb[0].mxu0 %vm260_vm3, %v614_v13  ;;  %642 = vmatprep.subr.mxu0 %v789_v2 }
  0x9e   : > { %643 = vmatpush3.msk.msra.mxu0 %vm264_vm2, %v423_v15  ;;  %644 = vmatprep.mubr.msk.f32.mxu0 %vm790_vm1, %v789_v2 }
  0xa1   : > { %645 = vmatmul.mubr.msk.f32.vlgmr.msra.gmra.mrb[2].mxu0 %vm260_vm3, %v619_v16 }
  0xab   : > { %v504_v23 = vpop.permute.xlu0 %503 }
  0xf8   : > { %v409_v17 = vpop.f32.mrb[0].mxu1 }
  0xf9   : > { %v641_v18 = vpop.f32.mrb[1].mxu1 }
 0x170   : > { %v333_v19 = vpop.f32.mrb[0].mxu0 }
 0x171   : > { %v636_v20 = vpop.f32.mrb[1].mxu0  ;;  %v410_v21 = vadd.f32 %v409_v17, %v333_v19 }
 0x174   : > { %v495_v22 = vpop.f32.mrb[2].mxu0 }
 0x175   : > { %v499_v24 = vadd.f32 %v495_v22, %v410_v21  ;;  %v646_v25 = vpop.f32.mrb[3].mxu0 }
 0x177   : > { %v506_v26 = vadd.f32 %v504_v23, %v499_v24 }
 0x179   : > { %507 = vst [vmem:[%s228_s8] sm:$0xff] %v506_v26 }
 0x17a   : > { %722 = shalt.err (!%p719_p5)
}
 0x17b   : > { %s723_s24 = scalar_lea.hbm %s909_s12, 128  ;;  %s727_s30 = scalar_lea.hbm %s960_s4, 256 }
 0x17c   : > { %p724_p6 = scmp.ne.s32.totalorder %s909_s12, %s723_s24  ;;  %p728_p10 = scmp.lt.u32.totalorder %s909_s12, %s960_s4 }
 0x17d   : > { %p729_p11 = scmp.lt.u32.totalorder %s727_s30, %s723_s24  ;;  %p731_p13 = scmp.lt.u32.totalorder %s723_s24, %s909_s12 }
 0x17e   : > { %p725_p7 = pnand %p724_p6, %p860_p4 }
 0x17f   : > { %p730_p12 = por %p729_p11, %p728_p10 }
 0x180   : > { %p726_p9 = pneg %p725_p7 }
 0x181   : > { %p732_p0 = por %p731_p13, %p730_p12 }
 0x183   : > { %p733_p1 = pnand %p732_p0, %p726_p9 }
 0x185   : > { %736 = shalt.err (!%p733_p1)
}
 0x186   : > { %647 = dma.vmem_to_hbm [thread:$0]  (%p860_p4), %s911_s9, 128, %s909_s12, %s509_s13  }
 0x187 PF: > { %p653_p2 = scmp.ge.s32.totalorder %s787_s20, 2  ;;  %s535_s7 = sand.u32 1, %s767_s15  }
 0x188   : > { %s536_s8 = scalar_lea.sflag [#allocation4], %s535_s7 }
 0x189   : > { %p650_p3 = pnand %p653_p2, %p867_p8 }
 0x18b   : > { %762 = dma.done.wait (!%p650_p3), %s536_s8, 128  }
 0x18c   : > { %764 = vsyncadd (!%p650_p3), %s536_s8, 4294967168  ;;  %s17_s20 = sadd.s32 1, %s787_s20   ;;  %s963_s15 = smov %s771_s16 }
 0x18d   : > { %p14_p5 = scmp.ge.s32.totalorder %s17_s20, 4   ;;  %s964_s16 = smov %s775_s17 }
 0x18e   : > { %s965_s17 = smov %s873_s28  ;;  %s966_s18 = smov %s783_s19 }
 0x18f   : > { %s967_s19 = smov %s969_s23  ;;  %16 = sbr.rel (!%p14_p5) target bundleno = 4 (0x4), region = 76 }
 0x196   :  { %541 = vsyncpa [#allocation4], 1 }
 0x197   :  { %543 = vsyncpa [#allocation4 + $0x1], 1 }

// kernel: tpu_custom_call.1
= control target key start
LH: loop header
LB: loop body
LE: loop exit
PB: predicated region body
PF: predicated region fallthrough
CT: control target
= control target key end

     0   :  { %9 = vsyncpa [#allocation4], 0  ;;  %s956_s0 = inlined_call_operand.vmem [shape: f32[2,1,4,18], index: 0, kind: input, shape index: {}]   ;;  %s957_s1 = inlined_call_operand.vmem [shape: f32[2,1,4,2], index: 1, kind: input, shape index: {}]   ;;  %s958_s2 = inlined_call_operand.vmem [shape: f32[3,8,4], index: 2, kind: input, shape index: {}]   ;;  %s959_s3 = inlined_call_operand.vmem [shape: f32[8,1], index: 3, kind: input, shape index: {}]   ;;  %s960_s4 = inlined_call_operand.hbm [shape: f32[2,8,16], index: 4, kind: output, shape index: {}]  }
   0x1   :  { %11 = vsyncpa [#allocation4 + $0x1], 0  ;;  %s820_s15 = smov 0   ;;  %s822_s16 = smov 0  }
   0x2   :  { %s824_s17 = smov 0   ;;  %s826_s18 = smov 0  }
   0x3   :  { %s828_s19 = smov 0   ;;  %s830_s20 = smov 0  }
   0x4 LB: > { %s606_s21 = sadd.s32 4294967295, %s787_s20   ;;  %s607_s22 = sadd.s32 4294967294, %s787_s20   ;;  %s787_s20 = sphi %s830_s20, %s17_s20   ;;  %s783_s19 = sphi %s828_s19, %s967_s19   ;;  %s779_s18 = sphi %s826_s18, %s966_s18   ;;  %s775_s17 = sphi %s824_s17, %s965_s17   ;;  %s771_s16 = sphi %s822_s16, %s964_s16   ;;  %s767_s15 = sphi %s820_s15, %s963_s15  }
   0x5   : > { %s29_s23 = sadd.s32 1, %s783_s19  ;;  %s136_s24 = sadd.s32 1, %s775_s17 }
   0x6   : > { %p31_p0 = scmp.ge.s32.totalorder %s29_s23, 2  ;;  %p146_p1 = scmp.ne.s32.totalorder %s775_s17, %s771_s16 }
   0x7   : > { %p147_p2 = scmp.eq.s32.totalorder %s606_s21, 1  ;;  %p152_p3 = scmp.ne.s32.totalorder %s771_s16, %s767_s15 }
   0x8   : > { %s969_s23 = smov (%p31_p0, %s29_s23), 0  ;;  %p153_p5 = scmp.eq.s32.totalorder %s607_s22, 1 }
   0x9   : > { %p860_p4 = por %p147_p2, %p146_p1  ;;  %s131_s26 = ssub.s32 %s783_s19, %s969_s23 }
   0xa   : > { %p610_p6 = scmp.ge.s32.totalorder %s787_s20, 1  ;;  %p134_p7 = scmp.eq.s32.totalorder %s131_s26, 0 }
   0xb   : > { %p867_p8 = por %p153_p5, %p152_p3  ;;  %p196_p9 = scmp.lt.s32.totalorder %s787_s20, 3 }
   0xc   : > { %s873_s28 = scalar_select %p134_p7, %s775_s17, %s136_s24  }
   0xd   : > { %p197_p10 = pnand %p610_p6, %p196_p9 }
   0xe   : > { %p229_p11 = scmp.lt.s32.totalorder (!%p197_p10), %s779_s18, 1  ;;  %vm245_vm0 = vcmask (!%p197_p10), 11264   ;;  %v789_v2 = vmov (!%p197_p10), 0.0   ;;  %vm790_vm1 = vmmov (!%p197_p10), 0   ;;  %vm264_vm2 = vcmask (!%p197_p10), 1043456   ;;  %v248_v6 = vld [vmem:[%s958_s2] sm:$0xff] (!%p197_p10) }
   0xf   : > { %200 = sbr.rel (%p197_p10) target bundleno = 391 (0x187), region = 36  ;;  %632 = vmatprep.subr.mxu0 (!%p197_p10), %v789_v2  ;;  %637 = vmatprep.subr.mxu1 (!%p197_p10), %v789_v2  ;;  %v791_v3 = vmov (!%p197_p10), 0   ;;  %vm260_vm3 = vcmask (!%p197_p10), 31744   ;;  %s792_s13 = smov (!%p197_p10), 126   ;;  %v500_v8 = vld [vmem:[%s959_s3] sm:$0xff] (!%p197_p10)  ;;  %vm258_vm4 = vcmask (!%p197_p10), 1039360  }
  0x10   : > { %634 = vmatprep.mubr.msk.f32.mxu0 (!%p197_p10), %vm790_vm1, %v789_v2  ;;  %639 = vmatprep.mubr.msk.f32.mxu1 (!%p197_p10), %vm790_vm1, %v789_v2  ;;  %s793_s14 = smov (!%p197_p10), 127   ;;  %vm422_vm5 = vcmask (!%p197_p10), 1031168   ;;  %v614_v13 = vld [vmem:[%s958_s2 + $0x8] sm:$0xff] (!%p197_p10)  ;;  %v619_v16 = vld [vmem:[%s958_s2 + $0x10] sm:$0xff] (!%p197_p10)  ;;  %s226_s5 = sand.u32 (!%p197_p10), 1, %s771_s16  }
  0x11   : > { %707 = vset.pattern.permute.xlu0 (!%p197_p10), %v791_v3  ;;  %s611_s6 = sshll.u32 (!%p197_p10), %s226_s5, 3 }
  0x12   : > { %s228_s8 = scalar_lea.vmem (!%p197_p10), [#allocation3], %s611_s6 }
  0x13   : > { %s523_s9 = sshll.u32 (!%p197_p10), %s228_s8, 4  ;;  %s911_s9 = int_to_ptr.vmem [resolvable:$true] %s523_s9 }
  0x16   : > { %s230_s29 = scalar_select %p229_p11, %s779_s18, 1 }
  0x18   : > { %s612_s30 = sshll.u32 %s230_s29, 2 }
  0x19   : > { %s235_s7 = scalar_lea.vmem %s956_s0, %s612_s30  ;;  %s240_s10 = scalar_lea.vmem %s957_s1, %s612_s30 }
  0x1a   : > { %v242_v0 = vld [vmem:[%s235_s7] sm:$0xf]  ;;  %s623_s7 = sshll.u32 %s779_s18, 7  ;;  %s794_s18 = smov [#allocation3]  }
  0x1b   : > { %v244_v1 = vld [vmem:[%s240_s10] sm:$0xf]  ;;  %243 = vst [vmem:[#allocation2] sm:$0xf] %v242_v0  ;;  %s909_s12 = scalar_lea.hbm %s960_s4, %s623_s7  ;;  %s713_s21 = sshll.u32 %s794_s18, 4  ;;  %s714_s21 = int_to_ptr.vmem [resolvable:$false] %s713_s21 }
  0x1c   : > { %246 = vst.msk [vmem:[#allocation2 + $0x4] sm:$0xf] %vm245_vm0, %v244_v1  ;;  %s715_s22 = scalar_lea.vmem %s714_s21, 256  ;;  %p716_p1 = scmp.lt.s32.totalorder %s911_s9, %s714_s21 }
  0x22   : > { %v247_v5 = vld [vmem:[#allocation2] sm:$0xf] }
  0x23   : > { %v413_v4 = vld [vmem:[#allocation2] sm:$0xff]  ;;  %638 = vmatpush3.msk.msra.mxu1 %vm264_vm2, %v247_v5 }
  0x24   : > { %418 = vrot.lane.b32.xlu1 %v413_v4, %s792_s13  ;;  %v417_v7 = vcombine.high %v413_v4, %v413_v4  ;;  %254 = vrot.lane.b32.xlu0 %v413_v4, %s793_s14 }
  0x25   : > { %640 = vmatmul.mubr.msk.f32.vlgmr.msra.gmra.mrb[0].mxu1 %vm260_vm3, %v248_v6 }
  0x28   : > { %420 = vrot.lane.b32.xlu1 %v417_v7, %s792_s13  ;;  %256 = vrot.lane.b32.xlu0 %v417_v7, %s793_s14  ;;  %s509_s13 = scalar_lea.sflag [#allocation4], %s226_s5  ;;  %s709_s14 = scalar_lea.vmem %s911_s9, 128 }
  0x29   : > { %p710_p12 = scmp.ne.s32.totalorder %s911_s9, %s709_s14  ;;  %p717_p2 = scmp.lt.s32.totalorder %s715_s22, %s709_s14 }
  0x2b   : > { %p711_p13 = pnand %p710_p12, %p860_p4  ;;  %p718_p3 = por %p717_p2, %p716_p1 }
  0x2c   : > { %503 = vperm.xlu0 %707, %v500_v8  }
  0x2d   : > { %p712_p0 = pneg %p711_p13 }
  0x2f   : > { %p719_p5 = pnand %p718_p3, %p712_p0 }
  0x96   : > { %v419_v9 = vpop.permute.xlu1 %418  ;;  %v255_v10 = vpop.permute.xlu0 %254 }
  0x9a   : > { %v421_v11 = vpop.permute.xlu1 %420  ;;  %v257_v12 = vpop.permute.xlu0 %256 }
  0x9b   : > { %v259_v14 = vsel %vm258_vm4, %v255_v10, %v257_v12  ;;  %v423_v15 = vsel %vm422_vm5, %v419_v9, %v421_v11 }
  0x9c   : > { %633 = vmatpush3.msk.msra.mxu0 %vm264_vm2, %v259_v14 }
  0x9d   : > { %635 = vmatmul.mubr.msk.f32.vlgmr.msra.gmra.mrb[0].mxu0 %vm260_vm3, %v614_v13  ;;  %642 = vmatprep.subr.mxu0 %v789_v2 }
  0x9e   : > { %643 = vmatpush3.msk.msra.mxu0 %vm264_vm2, %v423_v15  ;;  %644 = vmatprep.mubr.msk.f32.mxu0 %vm790_vm1, %v789_v2 }
  0xa1   : > { %645 = vmatmul.mubr.msk.f32.vlgmr.msra.gmra.mrb[2].mxu0 %vm260_vm3, %v619_v16 }
  0xab   : > { %v504_v23 = vpop.permute.xlu0 %503 }
  0xf8   : > { %v409_v17 = vpop.f32.mrb[0].mxu1 }
  0xf9   : > { %v641_v18 = vpop.f32.mrb[1].mxu1 }
 0x170   : > { %v333_v19 = vpop.f32.mrb[0].mxu0 }
 0x171   : > { %v636_v20 = vpop.f32.mrb[1].mxu0  ;;  %v410_v21 = vadd.f32 %v409_v17, %v333_v19 }
 0x174   : > { %v495_v22 = vpop.f32.mrb[2].mxu0 }
 0x175   : > { %v499_v24 = vadd.f32 %v495_v22, %v410_v21  ;;  %v646_v25 = vpop.f32.mrb[3].mxu0 }
 0x177   : > { %v506_v26 = vadd.f32 %v504_v23, %v499_v24 }
 0x179   : > { %507 = vst [vmem:[%s228_s8] sm:$0xff] %v506_v26 }
 0x17a   : > { %722 = shalt.err (!%p719_p5)
}
 0x17b   : > { %s723_s24 = scalar_lea.hbm %s909_s12, 128  ;;  %s727_s30 = scalar_lea.hbm %s960_s4, 256 }
 0x17c   : > { %p724_p6 = scmp.ne.s32.totalorder %s909_s12, %s723_s24  ;;  %p728_p10 = scmp.lt.u32.totalorder %s909_s12, %s960_s4 }
 0x17d   : > { %p729_p11 = scmp.lt.u32.totalorder %s727_s30, %s723_s24  ;;  %p731_p13 = scmp.lt.u32.totalorder %s723_s24, %s909_s12 }
 0x17e   : > { %p725_p7 = pnand %p724_p6, %p860_p4 }
 0x17f   : > { %p730_p12 = por %p729_p11, %p728_p10 }
 0x180   : > { %p726_p9 = pneg %p725_p7 }
 0x181   : > { %p732_p0 = por %p731_p13, %p730_p12 }
 0x183   : > { %p733_p1 = pnand %p732_p0, %p726_p9 }
 0x185   : > { %736 = shalt.err (!%p733_p1)
}
 0x186   : > { %647 = dma.vmem_to_hbm [thread:$0]  (%p860_p4), %s911_s9, 128, %s909_s12, %s509_s13  }
 0x187 PF: > { %p653_p2 = scmp.ge.s32.totalorder %s787_s20, 2  ;;  %s535_s7 = sand.u32 1, %s767_s15  }
 0x188   : > { %s536_s8 = scalar_lea.sflag [#allocation4], %s535_s7 }
 0x189   : > { %p650_p3 = pnand %p653_p2, %p867_p8 }
 0x18b   : > { %762 = dma.done.wait (!%p650_p3), %s536_s8, 128  }
 0x18c   : > { %764 = vsyncadd (!%p650_p3), %s536_s8, 4294967168  ;;  %s17_s20 = sadd.s32 1, %s787_s20   ;;  %s963_s15 = smov %s771_s16 }
 0x18d   : > { %p14_p5 = scmp.ge.s32.totalorder %s17_s20, 4   ;;  %s964_s16 = smov %s775_s17 }
 0x18e   : > { %s965_s17 = smov %s873_s28  ;;  %s966_s18 = smov %s783_s19 }
 0x18f   : > { %s967_s19 = smov %s969_s23  ;;  %16 = sbr.rel (!%p14_p5) target bundleno = 4 (0x4), region = 76 }
 0x196   :  { %541 = vsyncpa [#allocation4], 1 }
 0x197   :  { %543 = vsyncpa [#allocation4 + $0x1], 1 }

</bundles_post_ra>
